<compile_context>
chip_gen: v5e
topology: v5e:2x2
jax: 0.10.0
libtpu: 0.0.40
codegen_flags: <defaults>
</compile_context>

<pallas_src>
from functools import partial

import jax
import jax.numpy as jnp
from jax.experimental import pallas as pl
from jax.experimental.pallas import tpu as pltpu

N_FACTORS = 20  # the surrounding script sets n_factors = 20

_MAX_TILE_B = 32768       # per-step input DMA ~5 MiB -> step overhead ~10-20%
_MIN_SPLIT_TILE_B = 4096  # don't split the grid below ~640 KiB input per step


def _round_up(x, m):
    return -(-x // m) * m


def _pick_batch_tile(b):
    """Lane-aligned (multiple of 128) batch tile.

    Small/medium batches (<= 2 * _MIN_SPLIT_TILE_B lanes) run as a single grid
    step -- splitting them is pure per-step overhead (v5e/v6e have a single
    TensorCore anyway).  Large batches get a near-even split with the biggest
    tile <= _MAX_TILE_B, leaving >= 2 steps so v7x's two TensorCores both get
    work via dimension_semantics=("parallel",).
    """
    b128 = _round_up(b, 128)
    if b128 <= 2 * _MIN_SPLIT_TILE_B:
        return min(b128, _MAX_TILE_B)
    n_steps = max(2, -(-b128 // _MAX_TILE_B))
    return _round_up(-(-b128 // n_steps), 128)


def _mf_kernel(u_ref, v_ref, o_ref):
    # u_ref, v_ref: (F, TILE_B) VMEM tiles -- factors on sublanes, batch on lanes.
    # o_ref:        (1, TILE_B) lane-dense output block.
    o_ref[...] = jnp.sum(u_ref[...] * v_ref[...], axis=0, keepdims=True)


@partial(jax.jit, static_argnames=("tile_b",))
def matrix_factorization_forward(user_weight_t, item_weight_t, user_idx, item_idx,
                                 tile_b=None):
    """Equivalent of MatrixFactorization.forward(user, item).

    user_weight_t: (n_factors, n_users)  -- transposed Embedding.weight
    item_weight_t: (n_factors, n_items)  -- transposed Embedding.weight
    user_idx, item_idx: int32 (B,)
    returns: float32 (B,)
    """
    f = user_weight_t.shape[0]
    b = user_idx.shape[0]

    if tile_b is None:
        tile_b = _pick_batch_tile(b)
    b_pad = pl.cdiv(b, tile_b) * tile_b
    if b_pad != b:
        # Pad only the cheap int32 index vectors with a valid index (0); the
        # padded lanes are computed but sliced off below.  The gathered float
        # activations are materialized exactly once and never re-padded.
        pad = b_pad - b
        user_idx = jnp.pad(user_idx, (0, pad))
        item_idx = jnp.pad(item_idx, (0, pad))

    # Transposed gather (layout comes from the pre-transposed tables, no extra
    # HBM transpose): (F, b_pad) with batch on the lane (minor) axis.
    u_t = jnp.take(user_weight_t, user_idx, axis=1)
    v_t = jnp.take(item_weight_t, item_idx, axis=1)

    out = pl.pallas_call(
        _mf_kernel,
        out_shape=jax.ShapeDtypeStruct((1, b_pad), jnp.float32),
        grid_spec=pl.GridSpec(
            grid=(b_pad // tile_b,),
            in_specs=[
                pl.BlockSpec((f, tile_b), lambda i: (0, i)),
                pl.BlockSpec((f, tile_b), lambda i: (0, i)),
            ],
            out_specs=pl.BlockSpec((1, tile_b), lambda i: (0, i)),
        ),
        compiler_params=pltpu.CompilerParams(
            dimension_semantics=("parallel",),
            # 2 inputs x 2 pipeline buffers x (24 x 32768 x 4B) + output
            # buffers ~= 14 MiB at the largest tile -- clears v5e's 16 MiB
            # default scoped-VMEM limit with headroom on every generation.
            vmem_limit_bytes=32 * 1024 * 1024),
        cost_estimate=pl.CostEstimate(
            flops=2 * b_pad * f,
            transcendentals=0,
            bytes_accessed=2 * b_pad * f * 4 + b_pad * 4),
    )(u_t, v_t)

    return out[0, :b]  # (B,)


def init_params(key, n_users, n_items, n_factors):
    """Deterministic init matching torch: weight.data.uniform_(0, 0.05).

    Tables are stored transposed: (n_factors, num_embeddings).
    """
    k_u, k_i = jax.random.split(key)
    user_w_t = jax.random.uniform(
        k_u, (n_factors, n_users), minval=0.0, maxval=0.05, dtype=jnp.float32)
    item_w_t = jax.random.uniform(
        k_i, (n_factors, n_items), minval=0.0, maxval=0.05, dtype=jnp.float32)
    return user_w_t, item_w_t


def _reference(user_w_t, item_w_t, user_idx, item_idx):
    # Pure-JAX reference of the PyTorch forward semantics.
    return jnp.sum(user_w_t[:, user_idx] * item_w_t[:, item_idx], axis=0)


if __name__ == "__main__":
    key = jax.random.PRNGKey(0)

    # --- small check (batch < one tile; exercises index-padding path) ---
    n_users, n_items, n_factors = 10, 12, N_FACTORS
    batch = 8
    k_params, k_user, k_item, k2 = jax.random.split(key, 4)
    user_w_t, item_w_t = init_params(k_params, n_users, n_items, n_factors)
    user_idx = jax.random.randint(k_user, (batch,), 0, n_users, dtype=jnp.int32)
    item_idx = jax.random.randint(k_item, (batch,), 0, n_items, dtype=jnp.int32)

    out = matrix_factorization_forward(user_w_t, item_w_t, user_idx, item_idx)
    out = jax.block_until_ready(out)
    ref = _reference(user_w_t, item_w_t, user_idx, item_idx)
    assert out.shape == (batch,)
    assert jnp.allclose(out, ref, atol=1e-6, rtol=1e-6)

    # --- medium check: auto tile => single grid step (new small-batch policy) ---
    n_users2, n_items2, batch2 = 64, 80, 1000
    kp2, ku2, ki2 = jax.random.split(k2, 3)
    user_w_t2, item_w_t2 = init_params(kp2, n_users2, n_items2, n_factors)
    user_idx2 = jax.random.randint(ku2, (batch2,), 0, n_users2, dtype=jnp.int32)
    item_idx2 = jax.random.randint(ki2, (batch2,), 0, n_items2, dtype=jnp.int32)

    out2 = matrix_factorization_forward(user_w_t2, item_w_t2, user_idx2, item_idx2)
    out2 = jax.block_until_ready(out2)
    ref2 = _reference(user_w_t2, item_w_t2, user_idx2, item_idx2)
    assert out2.shape == (batch2,)
    assert jnp.allclose(out2, ref2, atol=1e-6, rtol=1e-6)

    # --- multi-tile check (forced small tile => grid=4, partial last tile) ---
    out3 = matrix_factorization_forward(user_w_t2, item_w_t2, user_idx2, item_idx2,
                                        tile_b=256)
    out3 = jax.block_until_ready(out3)
    assert out3.shape == (batch2,)
    assert jnp.allclose(out3, ref2, atol=1e-6, rtol=1e-6)

    # TODO(synk): Loader (pandas/Dataset preprocessing) is host-side data
    # plumbing with no Pallas equivalent; only the forward pass is implemented.
    print("KERNEL_OK")
</pallas_src>

<mosaic_0001>
module attributes {stable_mosaic.version = 11 : i64} {
  func.func @_mf_kernel(%arg0: i32, %arg1: memref<20x128xf32, #tpu.memory_space<vmem>>, %arg2: memref<20x128xf32, #tpu.memory_space<vmem>>, %arg3: memref<1x128xf32, #tpu.memory_space<vmem>>) attributes {dimension_semantics = [#tpu.dimension_semantics<parallel>], iteration_bounds = array<i64: 1>, scalar_prefetch = 0 : i64, scratch_operands = 0 : i64, tpu.core_type = #tpu.core_type<tc>, window_params = [{transform_indices = @transform_0, window_bounds = array<i64: 20, 128>}, {transform_indices = @transform_1, window_bounds = array<i64: 20, 128>}, {transform_indices = @transform_2, window_bounds = array<i64: 1, 128>}]} {
    %c0 = arith.constant 0 : index
    %c0_0 = arith.constant 0 : index
    %0 = vector.load %arg1[%c0, %c0_0] : memref<20x128xf32, #tpu.memory_space<vmem>>, vector<20x128xf32>
    %c0_1 = arith.constant 0 : index
    %c0_2 = arith.constant 0 : index
    %1 = vector.load %arg2[%c0_1, %c0_2] : memref<20x128xf32, #tpu.memory_space<vmem>>, vector<20x128xf32>
    %2 = arith.mulf %0, %1 : vector<20x128xf32>
    %cst = arith.constant dense<0.000000e+00> : vector<128xf32>
    %3 = vector.multi_reduction <add>, %2, %cst [0] : vector<20x128xf32> to vector<128xf32>
    %4 = vector.shape_cast %3 : vector<128xf32> to vector<1x128xf32>
    %c0_3 = arith.constant 0 : index
    %c0_4 = arith.constant 0 : index
    %5 = vector.load %arg3[%c0_3, %c0_4] : memref<1x128xf32, #tpu.memory_space<vmem>>, vector<1x128xf32>
    tpu.vector_store %arg3[%c0_3, %c0_4], %4 {strides = array<i32>} : memref<1x128xf32, #tpu.memory_space<vmem>>, vector<1x128xf32>,
    return
  }
  func.func @transform_0(%arg0: i32) -> (i32, i32) {
    %c0_i32 = arith.constant 0 : i32
    %c0_i32_0 = arith.constant 0 : i32
    return %c0_i32, %arg0 : i32, i32
  }
  func.func @transform_1(%arg0: i32) -> (i32, i32) {
    %c0_i32 = arith.constant 0 : i32
    %c0_i32_0 = arith.constant 0 : i32
    return %c0_i32, %arg0 : i32, i32
  }
  func.func @transform_2(%arg0: i32) -> (i32, i32) {
    %c0_i32 = arith.constant 0 : i32
    %c0_i32_0 = arith.constant 0 : i32
    return %c0_i32, %arg0 : i32, i32
  }
}

</mosaic_0001>

<bundles_post_ra>
// kernel: matrix_factorization_forward.1
= control target key start
LH: loop header
LB: loop body
LE: loop exit
PB: predicated region body
PF: predicated region fallthrough
CT: control target
= control target key end

     0   :  { %vm21_vm0 = vcmask 1043456   ;;  %s71_s0 = inlined_call_operand.vmem [shape: f32[20,128], index: 0, kind: input, shape index: {}]   ;;  %s72_s1 = inlined_call_operand.vmem [shape: f32[20,128], index: 1, kind: input, shape index: {}]   ;;  %s73_s2 = inlined_call_operand.vmem [shape: f32[1,128], index: 2, kind: output, shape index: {}]  }
   0x1   :  { %v11_v0 = vld [vmem:[%s71_s0] sm:$0xff]  ;;  %v12_v1 = vld [vmem:[%s71_s0 + $0x8] sm:$0xff]  ;;  %v13_v2 = vld [vmem:[%s71_s0 + $0x10] sm:$0xf] }
   0x2   :  { %v14_v3 = vld [vmem:[%s72_s1] sm:$0xff]  ;;  %v15_v4 = vld [vmem:[%s72_s1 + $0x8] sm:$0xff]  ;;  %v16_v5 = vld [vmem:[%s72_s1 + $0x10] sm:$0xf] }
   0x3   :  { %v17_v6 = vmul.f32 %v14_v3, %v11_v0  ;;  %v18_v7 = vmul.f32 %v15_v4, %v12_v1  ;;  %v19_v8 = vmul.f32 %v16_v5, %v13_v2 }
   0x5   :  { %v20_v9 = vadd.f32 %v18_v7, %v17_v6  ;;  %v22_v10 = vsel %vm21_vm0, %v19_v8, 0.0 }
   0x7   :  { %v23_v11 = vadd.f32 %v22_v10, %v20_v9 }
   0x9   :  { %v24_v12 = vrot.slane %v23_v11, 4 }
   0xb   :  { %v25_v13 = vadd.f32 %v24_v12, %v23_v11 }
   0xd   :  { %v26_v14 = vrot.slane %v25_v13, 2 }
   0xf   :  { %v27_v15 = vadd.f32 %v26_v14, %v25_v13 }
  0x11   :  { %v28_v16 = vrot.slane %v27_v15, 1 }
  0x13   :  { %v29_v17 = vadd.f32 %v28_v16, %v27_v15 }
  0x15   :  { %30 = vst [vmem:[%s73_s2] sm:$0x1] %v29_v17 }

</bundles_post_ra>
